<compile_context>
chip_gen: v6e
topology: v6e:2x2x1
jax: 0.10.0
libtpu: 0.0.40
codegen_flags: <defaults>
</compile_context>

<pallas_src>
import functools
import inspect
import math

import jax
import jax.numpy as jnp
from jax import lax
from jax.experimental import pallas as pl
from jax.experimental.pallas import tpu as pltpu


def _round_up(v, m):
    return -(-v // m) * m


def _largest_tile(dim, cap, granule=128):
    """Largest divisor of `dim` that is a multiple of `granule` and <= cap.

    `dim` is always padded to a multiple of `granule` by the wrapper, so the
    result is well defined and never silently falls back to the full dimension
    (which could blow past scoped / physical VMEM for awkward shapes)."""
    cap = max(cap, granule)
    best = granule
    d = granule
    while d <= min(dim, cap):
        if dim % d == 0:
            best = d
        d += granule
    return best


try:
    _HAS_PIPELINE_MODE = (
        hasattr(pl, "Buffered")
        and "pipeline_mode" in inspect.signature(pl.BlockSpec).parameters
    )
except Exception:  # pragma: no cover - defensive: feature detection only
    _HAS_PIPELINE_MODE = False


def _flatten_head_kernel(x_ref, w_ref, b_ref, o_ref, acc_ref, *, compute_dtype):
    # x_ref:   (Kb, Mp, tk) resident activations (already in compute dtype)
    # w_ref:   (tn, tk)     weight block, storage dtype, PyTorch [out, in] layout
    # b_ref:   (1, tn)      bias block
    # o_ref:   (Mp, tn)     output block (revisited across the K axis)
    # acc_ref: (Mp, tn)     f32 accumulator scratch
    k = pl.program_id(1)

    @pl.when(k == 0)
    def _():
        acc_ref[...] = jnp.zeros_like(acc_ref)

    x_blk = x_ref[k]                                   # (Mp, tk), leading-axis dyn index
    w_blk = w_ref[...].astype(compute_dtype)           # in-kernel cast, hidden under DMA
    # Contract last dims of x and w -> (Mp, tn); MXU takes the transposed RHS
    # directly, so the weight never needs a transpose anywhere.
    acc_ref[...] += lax.dot_general(
        x_blk, w_blk,
        dimension_numbers=(((1,), (1,)), ((), ())),
        preferred_element_type=jnp.float32)

    @pl.when(k == pl.num_programs(1) - 1)
    def _():
        o_ref[...] = (acc_ref[...] + b_ref[...].astype(jnp.float32)).astype(o_ref.dtype)


@functools.partial(jax.jit,
                   static_argnames=("compute_dtype", "out_dtype", "tn_max", "tk_max"))
def flatten_head_forward(x, weight, bias, *, compute_dtype=jnp.bfloat16,
                         out_dtype=None, tn_max=256, tk_max=2048):
    """x: [B, n_vars, d_model, patch_num]; weight: [target_window, nf] (PyTorch layout);
    bias: [target_window].  Set compute_dtype=jnp.float32 for a pure-f32 path."""
    B, n_vars, d_model, patch_num = x.shape
    nf = d_model * patch_num
    tw, nf_w = weight.shape
    assert nf_w == nf, "weight in_features must equal d_model * patch_num"
    out_dtype = out_dtype if out_dtype is not None else x.dtype

    # ---- shapes / tiles -----------------------------------------------------
    M = B * n_vars
    Mp = _round_up(M, 16)                 # packed-sublane-friendly row count
    nf_p = _round_up(nf, 128)             # pad only if not already 128-aligned
    tw_p = _round_up(tw, 128)

    # Keep >=2 N iterations so the "parallel" axis shards across both v7x TCs.
    tn_cap = tn_max
    if tw_p >= 256:
        tn_cap = min(tn_max, max(128, (tw_p // 2) // 128 * 128))
    tn = _largest_tile(tw_p, tn_cap)
    tk = _largest_tile(nf_p, tk_max)
    kb = nf_p // tk
    grid = (tw_p // tn, kb)

    # ---- operands -----------------------------------------------------------
    # Activations (tiny vs. the weight): flatten, pad, split into K-major blocks,
    # cast once.  This wrapper-side shuffle costs one pass over a tiny tensor.
    x2d = x.reshape(M, nf)
    if (Mp, nf_p) != (M, nf):
        x2d = jnp.pad(x2d, ((0, Mp - M), (0, nf_p - nf)))
    x3d = jnp.transpose(x2d.reshape(Mp, kb, tk), (1, 0, 2)).astype(compute_dtype)

    # Weight stays in its storage dtype and PyTorch layout; only padded if tw/nf
    # are not 128-multiples (guard path, not the common case).
    w = weight
    if (tw_p, nf_p) != (tw, nf):
        w = jnp.pad(w, ((0, tw_p - tw), (0, nf_p - nf)))
    b2d = bias.reshape(1, tw)
    if tw_p != tw:
        b2d = jnp.pad(b2d, ((0, 0), (0, tw_p - tw)))

    # ---- pallas_call plumbing -----------------------------------------------
    use_buffered = _HAS_PIPELINE_MODE and (grid[0] * grid[1] >= 3)
    w_spec_kwargs = {"pipeline_mode": pl.Buffered(3)} if use_buffered else {}
    w_bufs = 3 if use_buffered else 2

    x_itemsize = jnp.dtype(compute_dtype).itemsize
    w_itemsize = jnp.dtype(w.dtype).itemsize
    out_itemsize = jnp.dtype(out_dtype).itemsize
    b_itemsize = jnp.dtype(b2d.dtype).itemsize

    vmem_need = (w_bufs * tn * tk * w_itemsize          # streamed weight buffers
                 + 2 * kb * Mp * tk * x_itemsize        # resident activations
                 + Mp * tn * 4                          # f32 accumulator
                 + 2 * Mp * tn * out_itemsize           # output buffers
                 + 2 * 8 * tn * b_itemsize)             # bias (sublane-padded)
    vmem_limit = int(min(max(2 * vmem_need, 32 << 20), 60 << 20))

    flops = 2 * Mp * nf_p * tw_p
    bytes_accessed = (x3d.size * x_itemsize + w.size * w_itemsize
                      + b2d.size * b_itemsize + Mp * tw_p * out_itemsize)

    kernel = functools.partial(_flatten_head_kernel, compute_dtype=compute_dtype)

    out2d = pl.pallas_call(
        kernel,
        out_shape=jax.ShapeDtypeStruct((Mp, tw_p), out_dtype),
        grid_spec=pltpu.PrefetchScalarGridSpec(
            num_scalar_prefetch=0,
            grid=grid,
            in_specs=[
                # Resident activations: one block covering the whole (Kb, Mp, tk)
                # array, constant index_map -> fetched once, never re-DMA'd.
                pl.BlockSpec((kb, Mp, tk), lambda j, k: (0, 0, 0)),
                # Weight: streamed (tn, tk) blocks at HBM bandwidth, no transpose,
                # no wrapper-side cast; optionally 3-deep buffered.
                pl.BlockSpec((tn, tk), lambda j, k: (j, k), **w_spec_kwargs),
                # Bias: (1, tn) block aligned with the N tiling.
                pl.BlockSpec((1, tn), lambda j, k: (0, j)),
            ],
            out_specs=pl.BlockSpec((Mp, tn), lambda j, k: (0, j)),
            scratch_shapes=[pltpu.VMEM((Mp, tn), jnp.float32)],
        ),
        compiler_params=pltpu.CompilerParams(
            dimension_semantics=("parallel", "arbitrary"),
            vmem_limit_bytes=vmem_limit),
        cost_estimate=pl.CostEstimate(
            flops=flops, transcendentals=0, bytes_accessed=bytes_accessed),
    )(x3d, w, b2d)

    # Dropout with head_dropout=0 (eval) is the identity.
    return out2d[:M, :tw].reshape(B, n_vars, tw)


def init_flatten_head_params(key, nf, target_window, dtype=jnp.float32):
    # Deterministic init matching nn.Linear's default: U(-1/sqrt(nf), 1/sqrt(nf)).
    kw, kb = jax.random.split(key)
    bound = 1.0 / math.sqrt(nf)
    weight = jax.random.uniform(kw, (target_window, nf), dtype, -bound, bound)
    bias = jax.random.uniform(kb, (target_window,), dtype, -bound, bound)
    return weight, bias


if __name__ == "__main__":
    key = jax.random.PRNGKey(0)
    kx, kp = jax.random.split(key)

    # Small shapes consistent with the module: nf = d_model * patch_num.
    # n_vars=7 makes M = B*n_vars = 14 (not tile-aligned) to exercise row padding.
    B, n_vars, d_model, patch_num = 2, 7, 32, 16
    nf = d_model * patch_num            # 512
    target_window = 256

    x = jax.random.normal(kx, (B, n_vars, d_model, patch_num), jnp.float32)
    weight, bias = init_flatten_head_params(kp, nf, target_window)

    # Reference in plain JAX (same math as the PyTorch forward), f32.
    ref = x.reshape(B, n_vars, nf) @ weight.T + bias

    # 1) Default tiling: bf16 compute, weight streamed in f32 and cast in-kernel,
    #    tn capped at tw/2 -> N-"parallel" grid of 2 (dual-TC split on v7x).
    out = jax.block_until_ready(flatten_head_forward(x, weight, bias))
    assert out.shape == (B, n_vars, target_window)
    assert jnp.allclose(out.astype(jnp.float32), ref, atol=3e-2, rtol=3e-2)

    # 2) Small tile caps: exercises the K-accumulation path (grid (2, 2)), the
    #    in-kernel dynamic K-block index into the resident x, and 3-deep buffering.
    out2 = jax.block_until_ready(
        flatten_head_forward(x, weight, bias, tn_max=128, tk_max=256))
    assert jnp.allclose(out2.astype(jnp.float32), ref, atol=3e-2, rtol=3e-2)

    # 3) Pure-f32 validation path (no bf16 anywhere) against the f32 reference.
    out3 = jax.block_until_ready(
        flatten_head_forward(x, weight, bias, compute_dtype=jnp.float32,
                             tn_max=128, tk_max=256))
    assert jnp.allclose(out3.astype(jnp.float32), ref, atol=1e-4, rtol=1e-4)

    print("KERNEL_OK")
</pallas_src>

<mosaic_0001>
module attributes {stable_mosaic.version = 11 : i64} {
  func.func @_flatten_head_kernel(%arg0: i32, %arg1: i32, %arg2: memref<1x16x512xbf16, #tpu.memory_space<vmem>>, %arg3: memref<128x512xf32, #tpu.memory_space<vmem>>, %arg4: memref<1x128xf32, #tpu.memory_space<vmem>>, %arg5: memref<16x128xf32, #tpu.memory_space<vmem>>, %arg6: memref<16x128xf32, #tpu.memory_space<vmem>>) attributes {dimension_semantics = [#tpu.dimension_semantics<parallel>, #tpu.dimension_semantics<arbitrary>], iteration_bounds = array<i64: 2, 1>, scalar_prefetch = 0 : i64, scratch_operands = 1 : i64, tpu.core_type = #tpu.core_type<tc>, window_params = [{pipeline_mode = #tpu.pipeline_mode<synchronous>, transform_indices = @transform_0, window_bounds = array<i64: 1, 16, 512>}, {transform_indices = @transform_1, window_bounds = array<i64: 128, 512>}, {transform_indices = @transform_2, window_bounds = array<i64: 1, 128>}, {transform_indices = @transform_3, window_bounds = array<i64: 16, 128>}]} {
    %c0_i32 = arith.constant 0 : i32
    %0 = arith.cmpi eq, %arg1, %c0_i32 : i32
    %1 = arith.extui %0 : i1 to i32
    %c0_i32_0 = arith.constant 0 : i32
    %2 = arith.cmpi ne, %1, %c0_i32_0 : i32
    scf.if %2 {
      %cst_10 = arith.constant 0.000000e+00 : f32
      %15 = vector.broadcast %cst_10 : f32 to vector<16x128xf32>
      %c0_11 = arith.constant 0 : index
      %c0_12 = arith.constant 0 : index
      %16 = vector.load %arg6[%c0_11, %c0_12] : memref<16x128xf32, #tpu.memory_space<vmem>>, vector<16x128xf32>
      tpu.vector_store %arg6[%c0_11, %c0_12], %15 {strides = array<i32>} : memref<16x128xf32, #tpu.memory_space<vmem>>, vector<16x128xf32>,
    } else {
    }
    %3 = arith.index_cast %arg1 : i32 to index
    %c0 = arith.constant 0 : index
    %c0_1 = arith.constant 0 : index
    %4 = vector.load %arg2[%3, %c0, %c0_1] : memref<1x16x512xbf16, #tpu.memory_space<vmem>>, vector<1x16x512xbf16>
    %5 = vector.shape_cast %4 : vector<1x16x512xbf16> to vector<16x512xbf16>
    %c0_2 = arith.constant 0 : index
    %c0_3 = arith.constant 0 : index
    %6 = vector.load %arg3[%c0_2, %c0_3] : memref<128x512xf32, #tpu.memory_space<vmem>>, vector<128x512xf32>
    %7 = arith.truncf %6 : vector<128x512xf32> to vector<128x512xbf16>
    %c0_4 = arith.constant 0 : index
    %c0_5 = arith.constant 0 : index
    %8 = vector.load %arg6[%c0_4, %c0_5] : memref<16x128xf32, #tpu.memory_space<vmem>>, vector<16x128xf32>
    %cst = arith.constant dense<0.000000e+00> : vector<16x128xf32>
    %9 = tpu.matmul %5, %7, %cst {dimension_numbers = #tpu.dot_dimension_numbers<[1], [1], [0], [0], [0, 0, 1, 0], [], []>} : vector<16x512xbf16>, vector<128x512xbf16>, vector<16x128xf32> -> vector<16x128xf32>
    %10 = arith.addf %8, %9 : vector<16x128xf32>
    %c0_6 = arith.constant 0 : index
    %c0_7 = arith.constant 0 : index
    %11 = vector.load %arg6[%c0_6, %c0_7] : memref<16x128xf32, #tpu.memory_space<vmem>>, vector<16x128xf32>
    tpu.vector_store %arg6[%c0_6, %c0_7], %10 {strides = array<i32>} : memref<16x128xf32, #tpu.memory_space<vmem>>, vector<16x128xf32>,
    %c0_i32_8 = arith.constant 0 : i32
    %12 = arith.cmpi eq, %arg1, %c0_i32_8 : i32
    %13 = arith.extui %12 : i1 to i32
    %c0_i32_9 = arith.constant 0 : i32
    %14 = arith.cmpi ne, %13, %c0_i32_9 : i32
    scf.if %14 {
      %c0_10 = arith.constant 0 : index
      %c0_11 = arith.constant 0 : index
      %15 = vector.load %arg6[%c0_10, %c0_11] : memref<16x128xf32, #tpu.memory_space<vmem>>, vector<16x128xf32>
      %c0_12 = arith.constant 0 : index
      %c0_13 = arith.constant 0 : index
      %16 = vector.load %arg4[%c0_12, %c0_13] : memref<1x128xf32, #tpu.memory_space<vmem>>, vector<1x128xf32>
      %17 = vector.broadcast %16 : vector<1x128xf32> to vector<16x128xf32>
      %18 = arith.addf %15, %17 : vector<16x128xf32>
      %c0_14 = arith.constant 0 : index
      %c0_15 = arith.constant 0 : index
      %19 = vector.load %arg5[%c0_14, %c0_15] : memref<16x128xf32, #tpu.memory_space<vmem>>, vector<16x128xf32>
      tpu.vector_store %arg5[%c0_14, %c0_15], %18 {strides = array<i32>} : memref<16x128xf32, #tpu.memory_space<vmem>>, vector<16x128xf32>,
    } else {
    }
    return
  }
  func.func @transform_0(%arg0: i32, %arg1: i32) -> (i32, i32, i32) {
    %c0_i32 = arith.constant 0 : i32
    %c0_i32_0 = arith.constant 0 : i32
    %c0_i32_1 = arith.constant 0 : i32
    %c0_i32_2 = arith.constant 0 : i32
    return %c0_i32, %c0_i32_0, %c0_i32_1 : i32, i32, i32
  }
  func.func @transform_1(%arg0: i32, %arg1: i32) -> (i32, i32) {
    %c0_i32 = arith.constant 0 : i32
    return %arg0, %arg1 : i32, i32
  }
  func.func @transform_2(%arg0: i32, %arg1: i32) -> (i32, i32) {
    %c0_i32 = arith.constant 0 : i32
    %c0_i32_0 = arith.constant 0 : i32
    return %c0_i32, %arg0 : i32, i32
  }
  func.func @transform_3(%arg0: i32, %arg1: i32) -> (i32, i32) {
    %c0_i32 = arith.constant 0 : i32
    %c0_i32_0 = arith.constant 0 : i32
    return %c0_i32, %arg0 : i32, i32
  }
}

</mosaic_0001>

<bundles_post_ra>
// kernel: flatten_head_forward.1
= control target key start
LH: loop header
LB: loop body
LE: loop exit
PB: predicated region body
PF: predicated region fallthrough
CT: control target
= control target key end

     0   :  { %8 = vsyncpa [#allocation4], 0  ;;  %s959_s0 = inlined_call_operand.vmem [shape: bf16[1,16,512], index: 0, kind: input, shape index: {}]   ;;  %s960_s1 = inlined_call_operand.hbm [shape: f32[256,512], index: 1, kind: input, shape index: {}]   ;;  %s961_s2 = inlined_call_operand.vmem [shape: f32[1,256], index: 2, kind: input, shape index: {}]   ;;  %s962_s3 = inlined_call_operand.vmem [shape: f32[16,256], index: 3, kind: output, shape index: {}]  }
   0x1   :  { %10 = vsyncpa [#allocation4 + $0x1], 0  ;;  %s770_s12 = smov 0   ;;  %s772_s13 = smov 0  }
   0x2   :  { %s774_s14 = smov 0   ;;  %s776_s15 = smov 0  }
   0x3   :  { %s778_s16 = smov 0   ;;  %s780_s17 = smov 0  }
   0x4 LB: > { %s582_s18 = sadd.s32 4294967295, %s745_s17   ;;  %s28_s19 = sadd.s32 1, %s741_s16  ;;  %s745_s17 = sphi %s780_s17, %s16_s17   ;;  %s741_s16 = sphi %s778_s16, %s971_s16   ;;  %s737_s15 = sphi %s776_s15, %s970_s15   ;;  %s733_s14 = sphi %s774_s14, %s969_s14   ;;  %s729_s13 = sphi %s772_s13, %s968_s13   ;;  %s725_s12 = sphi %s770_s12, %s967_s12  }
   0x5   : > { %p30_p0 = scmp.ge.s32.totalorder %s28_s19, 2  ;;  %s58_s20 = sadd.s32 1, %s733_s14 }
   0x6   : > { %p65_p1 = scmp.ne.s32.totalorder %s733_s14, %s729_s13  ;;  %p66_p2 = scmp.eq.s32.totalorder %s745_s17, 0 }
   0x7   : > { %s973_s19 = smov (%p30_p0, %s28_s19), 0  ;;  %p71_p4 = scmp.ne.s32.totalorder %s729_s13, %s725_s12 }
   0x8   : > { %p806_p3 = por %p66_p2, %p65_p1  ;;  %s53_s22 = ssub.s32 %s741_s16, %s973_s19 }
   0x9   : > { %p72_p5 = scmp.eq.s32.totalorder %s582_s18, 0  ;;  %p56_p6 = scmp.eq.s32.totalorder %s53_s22, 0 }
   0xa   : > { %p121_p7 = scmp.eq.s32.totalorder %s582_s18, 1  ;;  %p610_p10 = scmp.lt.s32.totalorder %s745_s17, 2 }
   0xb   : > { %p813_p8 = por %p72_p5, %p71_p4  ;;  %s150_s26 = sand.u32 1, %s733_s14  }
   0xc   : > { %s818_s24 = scalar_select %p56_p6, %s733_s14, %s58_s20  }
   0xd   : > { %p820_p9 = por %p121_p7, %p65_p1  ;;  %s603_s27 = sshll.u32 %s741_s16, 13 }
   0xe   : > { %s586_s28 = sshll.u32 %s150_s26, 9  ;;  %s163_s4 = scalar_lea.hbm %s960_s1, %s603_s27 }
   0xf   : > { %s154_s5 = scalar_lea.vmem [#allocation3], %s586_s28  ;;  %p832_p11 = pnand %p610_p10, %p806_p3 }
  0x10   : > { %s164_s6 = sshll.u32 %s154_s5, 4  ;;  %s151_s8 = scalar_lea.sflag [#allocation4], %s150_s26  ;;  %s165_s6 = int_to_ptr.vmem [resolvable:$true] %s164_s6 }
  0x11   : > { %p669_p12 = pneg %p832_p11  ;;  %s680_s9 = scalar_lea.vmem %s165_s6, 8192 }
  0x12   : > { %p681_p13 = scmp.ne.s32.totalorder %s165_s6, %s680_s9  ;;  %s747_s10 = smov [#allocation3]  }
  0x13   : > { %s685_s11 = sshll.u32 %s747_s10, 4  ;;  %s686_s11 = int_to_ptr.vmem [resolvable:$false] %s685_s11 }
  0x14   : > { %p683_p0 = pnand %p681_p13, %p669_p12  ;;  %s687_s12 = scalar_lea.vmem %s686_s11, 16384 }
  0x15   : > { %p688_p2 = scmp.lt.s32.totalorder %s165_s6, %s686_s11  ;;  %p689_p4 = scmp.lt.s32.totalorder %s687_s12, %s680_s9 }
  0x16   : > { %p684_p1 = pneg %p683_p0 }
  0x17   : > { %p690_p5 = por %p689_p4, %p688_p2 }
  0x19   : > { %p691_p3 = pnand %p690_p5, %p684_p1 }
  0x1b   : > { %694 = shalt.err (!%p691_p3)
}
  0x1c   : > { %s748_s18 = smov 512   ;;  %s749_s20 = smov 32  }
  0x1d   : > { %609 = dma.hbm_to_vmem [thread:$0]  (!%p832_p11), %s163_s4, 8192, %s165_s6, %s151_s8, %s748_s18, %s748_s18, %s749_s20  }
  0x1e   : > { %p590_p6 = scmp.ge.s32.totalorder %s745_s17, 1  ;;  %p178_p7 = scmp.lt.s32.totalorder %s745_s17, 3 }
  0x20   : > { %p179_p10 = pnand %p590_p6, %p178_p7 }
  0x21   : > { %s843_s21 = sand.u32 (!%p179_p10), 1, %s729_s13  }
  0x22   : > { %182 = sbr.rel (%p179_p10) target bundleno = 319 (0x13f), region = 32  ;;  %s591_s22 = sshll.u32 (!%p179_p10), %s843_s21, 9 }
  0x23   : > { %s185_s26 = scalar_lea.sflag (!%p179_p10), [#allocation4], %s843_s21  ;;  %s847_s27 = scalar_lea.vmem (!%p179_p10), [#allocation3], %s591_s22 }
  0x27   : > { %720 = dma.done.wait (%p813_p8), %s185_s26, 8192  }
  0x28   : > { %722 = vsyncadd (%p813_p8), %s185_s26, 4294959104  ;;  %v289_v0 = vld [vmem:[%s847_s27 + $0x1c8] sm:$0xff]  ;;  %v291_v2 = vld [vmem:[%s847_s27 + $0x1d8] sm:$0xff]  ;;  %p215_p8 = scmp.lt.s32.totalorder %s737_s15, 1  ;;  %s592_s12 = sshll.u32 %s843_s21, 4 }
  0x29   : > { %v293_v1 = vld [vmem:[%s847_s27 + $0x1e8] sm:$0xff]  ;;  %v295_v4 = vld [vmem:[%s847_s27 + $0x1f8] sm:$0xff]  ;;  %v288_v5 = vld [vmem:[%s847_s27 + $0x1c0] sm:$0xff]  ;;  %s212_s18 = scalar_lea.vmem [#allocation5], %s592_s12  ;;  %s599_s20 = sshll.u32 (%p820_p9), %s737_s15, 3 }
  0x2a   : > { %v325_v3 = vpack.c.bf16 %v293_v1, %v289_v0  ;;  %v292_v6 = vld [vmem:[%s847_s27 + $0x1e0] sm:$0xff]  ;;  %v327_v7 = vpack.c.bf16 %v295_v4, %v291_v2  ;;  %v290_v9 = vld [vmem:[%s847_s27 + $0x1d0] sm:$0xff]  ;;  %v281_v11 = vld [vmem:[%s847_s27 + $0x188] sm:$0xff]  ;;  %s216_s8 = scalar_select %p215_p8, %s737_s15, 1 }
  0x2b   : > { %v324_v8 = vpack.c.bf16 %v292_v6, %v288_v5  ;;  %v294_v10 = vld [vmem:[%s847_s27 + $0x1f0] sm:$0xff]  ;;  %v285_v13 = vld [vmem:[%s847_s27 + $0x1a8] sm:$0xff]  ;;  %v283_v14 = vld [vmem:[%s847_s27 + $0x198] sm:$0xff]  ;;  %s460_s26 = scalar_lea.vmem (%p820_p9), %s962_s3, %s599_s20 }
  0x2c   : > { %350 = vmatprep.subr.bf16.mxu0 %v325_v3  ;;  %v326_v12 = vpack.c.bf16 %v294_v10, %v290_v9  ;;  %v287_v15 = vld [vmem:[%s847_s27 + $0x1b8] sm:$0xff]  ;;  %391 = vmatprep.subr.bf16.mxu1 %v327_v7  ;;  %v321_v16 = vpack.c.bf16 %v285_v13, %v281_v11  ;;  %v280_v18 = vld [vmem:[%s847_s27 + $0x180] sm:$0xff]  ;;  %v282_v20 = vld [vmem:[%s847_s27 + $0x190] sm:$0xff]  ;;  %s217_s11 = scalar_lea.vmem %s961_s2, %s216_s8 }
  0x2d   : > { %351 = vmatpush1.bf16.xpose.msra.mxu0 %v324_v8  ;;  %v323_v17 = vpack.c.bf16 %v287_v15, %v283_v14  ;;  %v284_v19 = vld [vmem:[%s847_s27 + $0x1a0] sm:$0xff]  ;;  %v286_v21 = vld [vmem:[%s847_s27 + $0x1b0] sm:$0xff]  ;;  %v273_v22 = vld [vmem:[%s847_s27 + $0x148] sm:$0xff] }
  0x2e   : > { %392 = vmatpush1.bf16.xpose.msra.mxu1 %v326_v12  ;;  %352 = vmatprep.subr.bf16.mxu0 %v321_v16  ;;  %v277_v23 = vld [vmem:[%s847_s27 + $0x168] sm:$0xff]  ;;  %v275_v24 = vld [vmem:[%s847_s27 + $0x158] sm:$0xff]  ;;  %v320_v26 = vpack.c.bf16 %v284_v19, %v280_v18  ;;  %v322_v27 = vpack.c.bf16 %v286_v21, %v282_v20  ;;  %v272_v30 = vld [vmem:[%s847_s27 + $0x140] sm:$0xff] }
  0x2f   : > { %393 = vmatprep.subr.bf16.mxu1 %v323_v17  ;;  %v279_v25 = vld [vmem:[%s847_s27 + $0x178] sm:$0xff]  ;;  %v317_v28 = vpack.c.bf16 %v277_v23, %v273_v22  ;;  %v276_v31 = vld [vmem:[%s847_s27 + $0x160] sm:$0xff]  ;;  %v274_v32 = vld [vmem:[%s847_s27 + $0x150] sm:$0xff] }
  0x30   : > { %v319_v29 = vpack.c.bf16 %v279_v25, %v275_v24  ;;  %v278_v33 = vld [vmem:[%s847_s27 + $0x170] sm:$0xff]  ;;  %v265_v34 = vld [vmem:[%s847_s27 + $0x108] sm:$0xff]  ;;  %v267_v36 = vld [vmem:[%s847_s27 + $0x118] sm:$0xff]  ;;  %v316_v38 = vpack.c.bf16 %v276_v31, %v272_v30 }
  0x31   : > { %v269_v35 = vld [vmem:[%s847_s27 + $0x128] sm:$0xff]  ;;  %v271_v37 = vld [vmem:[%s847_s27 + $0x138] sm:$0xff]  ;;  %v318_v39 = vpack.c.bf16 %v278_v33, %v274_v32  ;;  %v264_v42 = vld [vmem:[%s847_s27 + $0x100] sm:$0xff] }
  0x32   : > { %v313_v40 = vpack.c.bf16 %v269_v35, %v265_v34  ;;  %v315_v41 = vpack.c.bf16 %v271_v37, %v267_v36  ;;  %v268_v43 = vld [vmem:[%s847_s27 + $0x120] sm:$0xff]  ;;  %v266_v44 = vld [vmem:[%s847_s27 + $0x110] sm:$0xff]  ;;  %v257_v46 = vld [vmem:[%s847_s27 + $0xc8] sm:$0xff] }
  0x33   : > { %v270_v45 = vld [vmem:[%s847_s27 + $0x130] sm:$0xff]  ;;  %v261_v47 = vld [vmem:[%s847_s27 + $0xe8] sm:$0xff]  ;;  %v259_v48 = vld [vmem:[%s847_s27 + $0xd8] sm:$0xff]  ;;  %v312_v52 = vpack.c.bf16 %v268_v43, %v264_v42 }
  0x34   : > { %v663_v49 = vld [vmem:[%s959_s0 + $0x4] ss:$16 sps:$4 sm:$0xff]   ;;  %v263_v50 = vld [vmem:[%s847_s27 + $0xf8] sm:$0xff]  ;;  %v314_v53 = vpack.c.bf16 %v270_v45, %v266_v44  ;;  %v309_v54 = vpack.c.bf16 %v261_v47, %v257_v46  ;;  %v249_v60 = vld [vmem:[%s847_s27 + $0x88] sm:$0xff] }
  0x35   : > { %353 = vmatpush1.bf16.xpose.msra.mxu0 %v320_v26  ;;  %v666_v51 = vld [vmem:[%s959_s0 + $0xc] ss:$16 sps:$4 sm:$0xff]   ;;  %382 = vmatprep.mubr.bf16.mxu0 %v663_v49  ;;  %v311_v55 = vpack.c.bf16 %v263_v50, %v259_v48  ;;  %v256_v56 = vld [vmem:[%s847_s27 + $0xc0] sm:$0xff]  ;;  %v258_v58 = vld [vmem:[%s847_s27 + $0xd0] sm:$0xff] }
  0x36   : > { %394 = vmatpush1.bf16.xpose.msra.mxu1 %v322_v27  ;;  %354 = vmatprep.subr.bf16.mxu0 %v317_v28  ;;  %v260_v57 = vld [vmem:[%s847_s27 + $0xe0] sm:$0xff]  ;;  %v262_v59 = vld [vmem:[%s847_s27 + $0xf0] sm:$0xff]  ;;  %v253_v61 = vld [vmem:[%s847_s27 + $0xa8] sm:$0xff] }
  0x37   : > { %395 = vmatprep.subr.bf16.mxu1 %v319_v29  ;;  %423 = vmatprep.mubr.bf16.mxu1 %v666_v51  ;;  %v251_v62 = vld [vmem:[%s847_s27 + $0x98] sm:$0xff]  ;;  %v308_v0 = vpack.c.bf16 %v260_v57, %v256_v56  ;;  %v310_v1 = vpack.c.bf16 %v262_v59, %v258_v58  ;;  %v305_v2 = vpack.c.bf16 %v253_v61, %v249_v60  ;;  %v248_v4 = vld [vmem:[%s847_s27 + $0x80] sm:$0xff]  ;;  %v250_v6 = vld [vmem:[%s847_s27 + $0x90] sm:$0xff] }
  0x38   : > { %v255_v63 = vld [vmem:[%s847_s27 + $0xb8] sm:$0xff]  ;;  %v252_v5 = vld [vmem:[%s847_s27 + $0xa0] sm:$0xff]  ;;  %v254_v7 = vld [vmem:[%s847_s27 + $0xb0] sm:$0xff] }
  0x39   : > { %v307_v3 = vpack.c.bf16 %v255_v63, %v251_v62  ;;  %v241_v8 = vld [vmem:[%s847_s27 + $0x48] sm:$0xff]  ;;  %v243_v10 = vld [vmem:[%s847_s27 + $0x58] sm:$0xff]  ;;  %v304_v12 = vpack.c.bf16 %v252_v5, %v248_v4  ;;  %v306_v13 = vpack.c.bf16 %v254_v7, %v250_v6  ;;  %v240_v16 = vld [vmem:[%s847_s27 + $0x40] sm:$0xff] }
  0x3a   : > { %v245_v9 = vld [vmem:[%s847_s27 + $0x68] sm:$0xff]  ;;  %v247_v11 = vld [vmem:[%s847_s27 + $0x78] sm:$0xff]  ;;  %v244_v17 = vld [vmem:[%s847_s27 + $0x60] sm:$0xff] }
  0x3b   : > { %v301_v14 = vpack.c.bf16 %v245_v9, %v241_v8  ;;  %v303_v15 = vpack.c.bf16 %v247_v11, %v243_v10  ;;  %v242_v18 = vld [vmem:[%s847_s27 + $0x50] sm:$0xff]  ;;  %v233_v20 = vld [vmem:[%s847_s27 + $0x8] sm:$0xff]  ;;  %v235_v22 = vld [vmem:[%s847_s27 + $0x18] sm:$0xff]  ;;  %v300_v24 = vpack.c.bf16 %v244_v17, %v240_v16 }
  0x3c   : > { %v246_v19 = vld [vmem:[%s847_s27 + $0x70] sm:$0xff]  ;;  %v237_v21 = vld [vmem:[%s847_s27 + $0x28] sm:$0xff]  ;;  %v239_v23 = vld [vmem:[%s847_s27 + $0x38] sm:$0xff] }
  0x3d   : > { %355 = vmatpush1.bf16.xpose.msra.mxu0 %v316_v38  ;;  %v302_v25 = vpack.c.bf16 %v246_v19, %v242_v18  ;;  %v297_v26 = vpack.c.bf16 %v237_v21, %v233_v20  ;;  %v299_v27 = vpack.c.bf16 %v239_v23, %v235_v22  ;;  %v232_v28 = vld [vmem:[%s847_s27] sm:$0xff]  ;;  %v234_v30 = vld [vmem:[%s847_s27 + $0x10] sm:$0xff]  ;;  %v664_v35 = vld [vmem:[%s959_s0 + $0x8] ss:$16 sps:$4 sm:$0xff]  }
  0x3e   : > { %396 = vmatpush1.bf16.xpose.msra.mxu1 %v318_v39  ;;  %356 = vmatprep.subr.bf16.mxu0 %v313_v40  ;;  %v236_v29 = vld [vmem:[%s847_s27 + $0x20] sm:$0xff]  ;;  %v238_v31 = vld [vmem:[%s847_s27 + $0x30] sm:$0xff] }
  0x3f   : > { %397 = vmatprep.subr.bf16.mxu1 %v315_v41  ;;  %v296_v32 = vpack.c.bf16 %v236_v29, %v232_v28  ;;  %v298_v33 = vpack.c.bf16 %v238_v31, %v234_v30  ;;  %v661_v34 = vld [vmem:[%s959_s0] ss:$16 sps:$4 sm:$0xff]  }
  0x40   : > { %v597_v38 = vld [vmem:[%s217_s11] ss:$0 sm:$0xff] }
  0x45   : > { %357 = vmatpush1.bf16.xpose.msra.mxu0 %v312_v52 }
  0x46   : > { %398 = vmatpush1.bf16.xpose.msra.mxu1 %v314_v53  ;;  %358 = vmatprep.subr.bf16.mxu0 %v309_v54 }
  0x47   : > { %399 = vmatprep.subr.bf16.mxu1 %v311_v55 }
  0x4d   : > { %359 = vmatpush1.bf16.xpose.msra.mxu0 %v308_v0 }
  0x4e   : > { %400 = vmatpush1.bf16.xpose.msra.mxu1 %v310_v1  ;;  %360 = vmatprep.subr.bf16.mxu0 %v305_v2 }
  0x4f   : > { %401 = vmatprep.subr.bf16.mxu1 %v307_v3 }
  0x55   : > { %361 = vmatpush1.bf16.xpose.msra.mxu0 %v304_v12 }
  0x56   : > { %402 = vmatpush1.bf16.xpose.msra.mxu1 %v306_v13  ;;  %362 = vmatprep.subr.bf16.mxu0 %v301_v14 }
  0x57   : > { %403 = vmatprep.subr.bf16.mxu1 %v303_v15 }
  0x5d   : > { %363 = vmatpush1.bf16.xpose.msra.mxu0 %v300_v24 }
  0x5e   : > { %404 = vmatpush1.bf16.xpose.msra.mxu1 %v302_v25  ;;  %364 = vmatprep.subr.bf16.mxu0 %v297_v26 }
  0x5f   : > { %405 = vmatprep.subr.bf16.mxu1 %v299_v27 }
  0x65   : > { %365 = vmatpush1.bf16.xpose.msra.mxu0 %v296_v32 }
  0x66   : > { %406 = vmatpush1.bf16.xpose.msra.mxu1 %v298_v33 }
  0x6c   : > { %383 = vmatmul.mubr.bf16.vlgmr.msra.gmra.mxu0 %v661_v34 }
  0x6d   : > { %424 = vmatmul.mubr.bf16.vlgmr.msra.gmra.mxu1 %v664_v35 }
 0x12c   : > { %v384_v36 = vpop.f32.mrf.mxu0 }
 0x12d   : > { %v425_v37 = vpop.f32.mrf.mxu1 }
 0x12e   : > { %v426_v39 = vadd.f32 %v425_v37, %v384_v36  ;;  %v386_v40 = vpop.f32.mrf.mxu0 }
 0x12f   : > { %v427_v41 = vpop.f32.mrf.mxu1 }
 0x130   : > { %v448_v42 = vadd.f32 %v597_v38, %v426_v39  ;;  %v387_v43 = vpop.f32.mrf.mxu0 }
 0x131   : > { %v428_v44 = vpop.f32.mrf.mxu1 }
 0x132   : > { %450 = vst [vmem:[%s212_s18] sm:$0xff] %v448_v42  ;;  %v429_v45 = vadd.f32 %v428_v44, %v387_v43  ;;  %v389_v46 = vpop.f32.mrf.mxu0  ;;  %458 = sbr.rel (!%p820_p9) target bundleno = 319 (0x13f), region = 48 }
 0x133   : > { %v430_v47 = vpop.f32.mrf.mxu1 }
 0x134   : > { %v449_v48 = vadd.f32 %v597_v38, %v429_v45 }
 0x136   : > { %451 = vst [vmem:[%s212_s18 + $0x8] sm:$0xff] %v449_v48 }
 0x139   : > { %v491_v49 = vld [vmem:[%s212_s18] sm:$0xff] }
 0x13a   : > { %492 = vst [vmem:[%s460_s26] sm:$0xff] %v491_v49 }
 0x13d   : > { %v493_v50 = vld [vmem:[%s212_s18 + $0x8] sm:$0xff] }
 0x13e   : > { %494 = vst [vmem:[%s460_s26 + $0x10] sm:$0xff] %v493_v50 }
 0x13f PF: > { %s16_s17 = sadd.s32 1, %s745_s17   ;;  %s967_s12 = smov %s729_s13 }
 0x140   : > { %p13_p11 = scmp.ge.s32.totalorder %s16_s17, 4   ;;  %s968_s13 = smov %s733_s14 }
 0x141   : > { %s969_s14 = smov %s818_s24  ;;  %s970_s15 = smov %s741_s16 }
 0x142   : > { %s971_s16 = smov %s973_s19  ;;  %15 = sbr.rel (!%p13_p11) target bundleno = 4 (0x4), region = 122 }
 0x147   :  { %510 = vsyncpa [#allocation4], 1 }
 0x148   :  { %512 = vsyncpa [#allocation4 + $0x1], 1 }

</bundles_post_ra>
